<compile_context>
chip_gen: v7x
topology: tpu7x:2x2x1
jax: 0.10.0
libtpu: 0.0.40
codegen_flags: <defaults>
</compile_context>

<pallas_src>
import jax
import jax.numpy as jnp
from jax.experimental import pallas as pl
from jax.experimental.pallas import tpu as pltpu

INPUT_SIZE = 17    # len(input_features)
OUTPUT_SIZE = 11   # len(output_features)
H1, H2, H3 = 256, 128, 64
BN_EPS = 1e-5

SUBLANE = 8
MAX_TB = 2048      # batch-tile cap (fits comfortably in VMEM on v5e/v6e/v7x)


def _round_up(n, m):
    return ((n + m - 1) // m) * m


# ---------------------------------------------------------------------------
# Kernel: plain 4-layer MLP on BN-folded operands (one batch tile per step).
# ---------------------------------------------------------------------------
def _mlp_kernel(x_ref,
                w1_ref, b1_ref,
                w2_ref, b2_ref,
                w3_ref, b3_ref,
                w4_ref, b4_ref,
                out_ref):
    x = x_ref[...]                                                   # (tb, 17)

    h = jnp.dot(x, w1_ref[...], preferred_element_type=jnp.float32) + b1_ref[...]
    h = jnp.maximum(h, 0.0)                                          # (tb, 256)

    h = jnp.dot(h, w2_ref[...], preferred_element_type=jnp.float32) + b2_ref[...]
    h = jnp.maximum(h, 0.0)                                          # (tb, 128)

    h = jnp.dot(h, w3_ref[...], preferred_element_type=jnp.float32) + b3_ref[...]
    h = jnp.maximum(h, 0.0)                                          # (tb, 64)

    y = jnp.dot(h, w4_ref[...], preferred_element_type=jnp.float32) + b4_ref[...]
    out_ref[...] = y.astype(out_ref.dtype)                           # (tb, 11)


# ---------------------------------------------------------------------------
# One-time parameter preparation: fold eval-mode BatchNorm into fc1/fc2.
# No padding of any kind — all operands keep their natural shapes.
# ---------------------------------------------------------------------------
def prepare_params(params):
    s1 = params["g1"] / jnp.sqrt(params["v1"] + BN_EPS)              # (1, 256)
    s2 = params["g2"] / jnp.sqrt(params["v2"] + BN_EPS)              # (1, 128)

    w1 = params["w1"] * s1                                           # (17, 256)
    b1 = (params["b1"] - params["m1"]) * s1 + params["be1"]          # (1, 256)
    w2 = params["w2"] * s2                                           # (256, 128)
    b2 = (params["b2"] - params["m2"]) * s2 + params["be2"]          # (1, 128)

    return (w1, b1, w2, b2,
            params["w3"], params["b3"],                              # (128,64),(1,64)
            params["w4"], params["b4"])                              # (64,11), (1,11)


# ---------------------------------------------------------------------------
# Wrapper: batch-tiled grid, weights VMEM-resident across grid steps.
# ---------------------------------------------------------------------------
def body_measurement_forward(x, folded):
    """x: (B, 17) float32. folded: output of prepare_params. Returns (B, 11)."""
    B = x.shape[0]

    # Pick the number of grid steps first: ceil(B / MAX_TB), but force >= 2
    # steps whenever possible so v7x's two TensorCores both get work.
    steps = max(1, -(-B // MAX_TB))
    if steps == 1 and B > SUBLANE:
        steps = 2
    tb = max(SUBLANE, _round_up(-(-B // steps), SUBLANE))
    Bp = _round_up(B, tb)

    xp = x.astype(jnp.float32)
    if Bp != B:
        # Batch-pad only (17 real feature columns kept; no lane padding in HBM).
        # Padded rows produce garbage through the bias/ReLU chain and are
        # sliced off below — do not reuse them.
        xp = jnp.pad(xp, ((0, Bp - B), (0, 0)))

    w1, b1, w2, b2, w3, b3, w4, b4 = folded

    def resident(shape):
        # Small parameter: same block every grid step -> stays VMEM-resident.
        return pl.BlockSpec(shape, lambda i: (0, 0))

    mac = INPUT_SIZE * H1 + H1 * H2 + H2 * H3 + H3 * OUTPUT_SIZE
    param_bytes = 4 * (mac + H1 + H2 + H3 + OUTPUT_SIZE)
    cost = pl.CostEstimate(
        flops=2 * Bp * mac,
        transcendentals=0,
        bytes_accessed=4 * Bp * (INPUT_SIZE + OUTPUT_SIZE) + param_bytes,
    )

    out = pl.pallas_call(
        _mlp_kernel,
        out_shape=jax.ShapeDtypeStruct((Bp, OUTPUT_SIZE), jnp.float32),
        grid=(Bp // tb,),
        in_specs=[
            pl.BlockSpec((tb, INPUT_SIZE), lambda i: (i, 0)),  # x: pipelined tiles
            resident((INPUT_SIZE, H1)), resident((1, H1)),
            resident((H1, H2)),         resident((1, H2)),
            resident((H2, H3)),         resident((1, H3)),
            resident((H3, OUTPUT_SIZE)), resident((1, OUTPUT_SIZE)),
        ],
        out_specs=pl.BlockSpec((tb, OUTPUT_SIZE), lambda i: (i, 0)),
        compiler_params=pltpu.CompilerParams(
            dimension_semantics=("parallel",),
            vmem_limit_bytes=32 * 1024 * 1024,   # ample headroom on v5e/v6e/v7x
        ),
        cost_estimate=cost,
    )(xp, w1, b1, w2, b2, w3, b3, w4, b4)

    return out if Bp == B else out[:B]


# ---------------------------------------------------------------------------
# Deterministic parameter init (PyTorch-style) + pure-JAX reference.
# ---------------------------------------------------------------------------
def init_params(key):
    """Weights stored (in, out); row-vector biases; eval-mode BN stats."""
    ks = jax.random.split(key, 16)

    def lin(kw, kb, fan_in, fan_out):
        # PyTorch nn.Linear default: U(-1/sqrt(fan_in), 1/sqrt(fan_in))
        bound = 1.0 / jnp.sqrt(fan_in)
        w = jax.random.uniform(kw, (fan_in, fan_out), jnp.float32, -bound, bound)
        b = jax.random.uniform(kb, (1, fan_out), jnp.float32, -bound, bound)
        return w, b

    w1, b1 = lin(ks[0], ks[1], INPUT_SIZE, H1)
    w2, b2 = lin(ks[2], ks[3], H1, H2)
    w3, b3 = lin(ks[4], ks[5], H2, H3)
    w4, b4 = lin(ks[6], ks[7], H3, OUTPUT_SIZE)

    # BatchNorm params (eval mode): nonzero stats to exercise the affine path.
    g1 = 1.0 + 0.1 * jax.random.normal(ks[8], (1, H1), jnp.float32)
    be1 = 0.1 * jax.random.normal(ks[9], (1, H1), jnp.float32)
    m1 = 0.05 * jax.random.normal(ks[10], (1, H1), jnp.float32)
    v1 = 1.0 + 0.1 * jnp.abs(jax.random.normal(ks[11], (1, H1), jnp.float32))

    g2 = 1.0 + 0.1 * jax.random.normal(ks[12], (1, H2), jnp.float32)
    be2 = 0.1 * jax.random.normal(ks[13], (1, H2), jnp.float32)
    m2 = 0.05 * jax.random.normal(ks[14], (1, H2), jnp.float32)
    v2 = 1.0 + 0.1 * jnp.abs(jax.random.normal(ks[15], (1, H2), jnp.float32))

    return dict(
        w1=w1, b1=b1, g1=g1, be1=be1, m1=m1, v1=v1,
        w2=w2, b2=b2, g2=g2, be2=be2, m2=m2, v2=v2,
        w3=w3, b3=b3, w4=w4, b4=b4,
    )


def reference_forward(x, p):
    """Pure-JAX reference of the same forward pass (eval-mode BN)."""
    h = x @ p["w1"] + p["b1"]
    h = (h - p["m1"]) * (p["g1"] / jnp.sqrt(p["v1"] + BN_EPS)) + p["be1"]
    h = jnp.maximum(h, 0.0)
    h = h @ p["w2"] + p["b2"]
    h = (h - p["m2"]) * (p["g2"] / jnp.sqrt(p["v2"] + BN_EPS)) + p["be2"]
    h = jnp.maximum(h, 0.0)
    h = jnp.maximum(h @ p["w3"] + p["b3"], 0.0)
    return h @ p["w4"] + p["b4"]


if __name__ == "__main__":
    key = jax.random.PRNGKey(0)
    k_params, k_x1, k_x2 = jax.random.split(key, 3)

    params = init_params(k_params)
    folded = prepare_params(params)        # one-time BN fold (no padding)

    # Case 1: batch=16 -> exact multiple of the tile, 2-step grid (both cores).
    x1 = jax.random.normal(k_x1, (16, INPUT_SIZE), jnp.float32)
    out1 = jax.block_until_ready(body_measurement_forward(x1, folded))
    ref1 = reference_forward(x1, params)
    assert out1.shape == (16, OUTPUT_SIZE)
    assert jnp.allclose(out1, ref1, atol=1e-4, rtol=1e-4), "mismatch (batch=16)"

    # Case 2: batch=5 -> exercises the batch-padding + slice path.
    x2 = jax.random.normal(k_x2, (5, INPUT_SIZE), jnp.float32)
    out2 = jax.block_until_ready(body_measurement_forward(x2, folded))
    ref2 = reference_forward(x2, params)
    assert out2.shape == (5, OUTPUT_SIZE)
    assert jnp.allclose(out2, ref2, atol=1e-4, rtol=1e-4), "mismatch (batch=5)"

    print("KERNEL_OK")
</pallas_src>

<mosaic_0001>
module attributes {stable_mosaic.version = 11 : i64} {
  func.func @_mlp_kernel(%arg0: i32, %arg1: memref<8x17xf32, #tpu.memory_space<vmem>>, %arg2: memref<17x256xf32, #tpu.memory_space<vmem>>, %arg3: memref<1x256xf32, #tpu.memory_space<vmem>>, %arg4: memref<256x128xf32, #tpu.memory_space<vmem>>, %arg5: memref<1x128xf32, #tpu.memory_space<vmem>>, %arg6: memref<128x64xf32, #tpu.memory_space<vmem>>, %arg7: memref<1x64xf32, #tpu.memory_space<vmem>>, %arg8: memref<64x11xf32, #tpu.memory_space<vmem>>, %arg9: memref<1x11xf32, #tpu.memory_space<vmem>>, %arg10: memref<8x11xf32, #tpu.memory_space<vmem>>) attributes {dimension_semantics = [#tpu.dimension_semantics<parallel>], iteration_bounds = array<i64: 2>, scalar_prefetch = 0 : i64, scratch_operands = 0 : i64, tpu.core_type = #tpu.core_type<tc>, window_params = [{transform_indices = @transform_0, window_bounds = array<i64: 8, 17>}, {pipeline_mode = #tpu.pipeline_mode<synchronous>, transform_indices = @transform_1, window_bounds = array<i64: 17, 256>}, {pipeline_mode = #tpu.pipeline_mode<synchronous>, transform_indices = @transform_2, window_bounds = array<i64: 1, 256>}, {pipeline_mode = #tpu.pipeline_mode<synchronous>, transform_indices = @transform_3, window_bounds = array<i64: 256, 128>}, {pipeline_mode = #tpu.pipeline_mode<synchronous>, transform_indices = @transform_4, window_bounds = array<i64: 1, 128>}, {pipeline_mode = #tpu.pipeline_mode<synchronous>, transform_indices = @transform_5, window_bounds = array<i64: 128, 64>}, {pipeline_mode = #tpu.pipeline_mode<synchronous>, transform_indices = @transform_6, window_bounds = array<i64: 1, 64>}, {pipeline_mode = #tpu.pipeline_mode<synchronous>, transform_indices = @transform_7, window_bounds = array<i64: 64, 11>}, {pipeline_mode = #tpu.pipeline_mode<synchronous>, transform_indices = @transform_8, window_bounds = array<i64: 1, 11>}, {transform_indices = @transform_9, window_bounds = array<i64: 8, 11>}]} {
    %c0 = arith.constant 0 : index
    %c0_0 = arith.constant 0 : index
    %0 = vector.load %arg1[%c0, %c0_0] : memref<8x17xf32, #tpu.memory_space<vmem>>, vector<8x17xf32>
    %c0_1 = arith.constant 0 : index
    %c0_2 = arith.constant 0 : index
    %1 = vector.load %arg2[%c0_1, %c0_2] : memref<17x256xf32, #tpu.memory_space<vmem>>, vector<17x256xf32>
    %cst = arith.constant dense<0.000000e+00> : vector<8x256xf32>
    %2 = tpu.matmul %0, %1, %cst {dimension_numbers = #tpu.dot_dimension_numbers<[1], [0], [0], [1], [0, 0, 1, 1], [], []>} : vector<8x17xf32>, vector<17x256xf32>, vector<8x256xf32> -> vector<8x256xf32>
    %c0_3 = arith.constant 0 : index
    %c0_4 = arith.constant 0 : index
    %3 = vector.load %arg3[%c0_3, %c0_4] : memref<1x256xf32, #tpu.memory_space<vmem>>, vector<1x256xf32>
    %4 = vector.broadcast %3 : vector<1x256xf32> to vector<8x256xf32>
    %5 = arith.addf %2, %4 : vector<8x256xf32>
    %cst_5 = arith.constant 0.000000e+00 : f32
    %6 = vector.broadcast %cst_5 : f32 to vector<8x256xf32>
    %7 = arith.maximumf %5, %6 : vector<8x256xf32>
    %c0_6 = arith.constant 0 : index
    %c0_7 = arith.constant 0 : index
    %8 = vector.load %arg4[%c0_6, %c0_7] : memref<256x128xf32, #tpu.memory_space<vmem>>, vector<256x128xf32>
    %cst_8 = arith.constant dense<0.000000e+00> : vector<8x128xf32>
    %9 = tpu.matmul %7, %8, %cst_8 {dimension_numbers = #tpu.dot_dimension_numbers<[1], [0], [0], [1], [0, 0, 1, 1], [], []>} : vector<8x256xf32>, vector<256x128xf32>, vector<8x128xf32> -> vector<8x128xf32>
    %c0_9 = arith.constant 0 : index
    %c0_10 = arith.constant 0 : index
    %10 = vector.load %arg5[%c0_9, %c0_10] : memref<1x128xf32, #tpu.memory_space<vmem>>, vector<1x128xf32>
    %11 = vector.broadcast %10 : vector<1x128xf32> to vector<8x128xf32>
    %12 = arith.addf %9, %11 : vector<8x128xf32>
    %cst_11 = arith.constant 0.000000e+00 : f32
    %13 = vector.broadcast %cst_11 : f32 to vector<8x128xf32>
    %14 = arith.maximumf %12, %13 : vector<8x128xf32>
    %c0_12 = arith.constant 0 : index
    %c0_13 = arith.constant 0 : index
    %15 = vector.load %arg6[%c0_12, %c0_13] : memref<128x64xf32, #tpu.memory_space<vmem>>, vector<128x64xf32>
    %cst_14 = arith.constant dense<0.000000e+00> : vector<8x64xf32>
    %16 = tpu.matmul %14, %15, %cst_14 {dimension_numbers = #tpu.dot_dimension_numbers<[1], [0], [0], [1], [0, 0, 1, 1], [], []>} : vector<8x128xf32>, vector<128x64xf32>, vector<8x64xf32> -> vector<8x64xf32>
    %c0_15 = arith.constant 0 : index
    %c0_16 = arith.constant 0 : index
    %17 = vector.load %arg7[%c0_15, %c0_16] : memref<1x64xf32, #tpu.memory_space<vmem>>, vector<1x64xf32>
    %18 = vector.broadcast %17 : vector<1x64xf32> to vector<8x64xf32>
    %19 = arith.addf %16, %18 : vector<8x64xf32>
    %cst_17 = arith.constant 0.000000e+00 : f32
    %20 = vector.broadcast %cst_17 : f32 to vector<8x64xf32>
    %21 = arith.maximumf %19, %20 : vector<8x64xf32>
    %c0_18 = arith.constant 0 : index
    %c0_19 = arith.constant 0 : index
    %22 = vector.load %arg8[%c0_18, %c0_19] : memref<64x11xf32, #tpu.memory_space<vmem>>, vector<64x11xf32>
    %cst_20 = arith.constant dense<0.000000e+00> : vector<8x11xf32>
    %23 = tpu.matmul %21, %22, %cst_20 {dimension_numbers = #tpu.dot_dimension_numbers<[1], [0], [0], [1], [0, 0, 1, 1], [], []>} : vector<8x64xf32>, vector<64x11xf32>, vector<8x11xf32> -> vector<8x11xf32>
    %c0_21 = arith.constant 0 : index
    %c0_22 = arith.constant 0 : index
    %24 = vector.load %arg9[%c0_21, %c0_22] : memref<1x11xf32, #tpu.memory_space<vmem>>, vector<1x11xf32>
    %25 = vector.broadcast %24 : vector<1x11xf32> to vector<8x11xf32>
    %26 = arith.addf %23, %25 : vector<8x11xf32>
    %c0_23 = arith.constant 0 : index
    %c0_24 = arith.constant 0 : index
    %27 = vector.load %arg10[%c0_23, %c0_24] : memref<8x11xf32, #tpu.memory_space<vmem>>, vector<8x11xf32>
    tpu.vector_store %arg10[%c0_23, %c0_24], %26 {strides = array<i32>} : memref<8x11xf32, #tpu.memory_space<vmem>>, vector<8x11xf32>,
    return
  }
  func.func @transform_0(%arg0: i32) -> (i32, i32) {
    %c0_i32 = arith.constant 0 : i32
    %c0_i32_0 = arith.constant 0 : i32
    return %arg0, %c0_i32 : i32, i32
  }
  func.func @transform_1(%arg0: i32) -> (i32, i32) {
    %c0_i32 = arith.constant 0 : i32
    %c0_i32_0 = arith.constant 0 : i32
    %c0_i32_1 = arith.constant 0 : i32
    return %c0_i32, %c0_i32_0 : i32, i32
  }
  func.func @transform_2(%arg0: i32) -> (i32, i32) {
    %c0_i32 = arith.constant 0 : i32
    %c0_i32_0 = arith.constant 0 : i32
    %c0_i32_1 = arith.constant 0 : i32
    return %c0_i32, %c0_i32_0 : i32, i32
  }
  func.func @transform_3(%arg0: i32) -> (i32, i32) {
    %c0_i32 = arith.constant 0 : i32
    %c0_i32_0 = arith.constant 0 : i32
    %c0_i32_1 = arith.constant 0 : i32
    return %c0_i32, %c0_i32_0 : i32, i32
  }
  func.func @transform_4(%arg0: i32) -> (i32, i32) {
    %c0_i32 = arith.constant 0 : i32
    %c0_i32_0 = arith.constant 0 : i32
    %c0_i32_1 = arith.constant 0 : i32
    return %c0_i32, %c0_i32_0 : i32, i32
  }
  func.func @transform_5(%arg0: i32) -> (i32, i32) {
    %c0_i32 = arith.constant 0 : i32
    %c0_i32_0 = arith.constant 0 : i32
    %c0_i32_1 = arith.constant 0 : i32
    return %c0_i32, %c0_i32_0 : i32, i32
  }
  func.func @transform_6(%arg0: i32) -> (i32, i32) {
    %c0_i32 = arith.constant 0 : i32
    %c0_i32_0 = arith.constant 0 : i32
    %c0_i32_1 = arith.constant 0 : i32
    return %c0_i32, %c0_i32_0 : i32, i32
  }
  func.func @transform_7(%arg0: i32) -> (i32, i32) {
    %c0_i32 = arith.constant 0 : i32
    %c0_i32_0 = arith.constant 0 : i32
    %c0_i32_1 = arith.constant 0 : i32
    return %c0_i32, %c0_i32_0 : i32, i32
  }
  func.func @transform_8(%arg0: i32) -> (i32, i32) {
    %c0_i32 = arith.constant 0 : i32
    %c0_i32_0 = arith.constant 0 : i32
    %c0_i32_1 = arith.constant 0 : i32
    return %c0_i32, %c0_i32_0 : i32, i32
  }
  func.func @transform_9(%arg0: i32) -> (i32, i32) {
    %c0_i32 = arith.constant 0 : i32
    %c0_i32_0 = arith.constant 0 : i32
    return %arg0, %c0_i32 : i32, i32
  }
}

</mosaic_0001>

<bundles_post_ra>
// kernel: tpu_custom_call.1
= control target key start
LH: loop header
LB: loop body
LE: loop exit
PB: predicated region body
PF: predicated region fallthrough
CT: control target
= control target key end

     0   :  { %14 = vsyncpa [#allocation3], 0  ;;  %s1572_s0 = inlined_call_operand.vmem [shape: f32[16,17], index: 0, kind: input, shape index: {}]   ;;  %s1573_s1 = inlined_call_operand.hbm [shape: f32[17,256], index: 1, kind: input, shape index: {}]   ;;  %s1574_s2 = inlined_call_operand.vmem [shape: f32[1,256], index: 2, kind: input, shape index: {}]   ;;  %s1575_s3 = inlined_call_operand.vmem [shape: f32[256,128], index: 3, kind: input, shape index: {}]   ;;  %s1576_s4 = inlined_call_operand.vmem [shape: f32[1,128], index: 4, kind: input, shape index: {}]   ;;  %s1577_s5 = inlined_call_operand.vmem [shape: f32[128,64], index: 5, kind: input, shape index: {}]   ;;  %s1578_s6 = inlined_call_operand.vmem [shape: f32[1,64], index: 6, kind: input, shape index: {}]   ;;  %s1579_s7 = inlined_call_operand.vmem [shape: f32[64,11], index: 7, kind: input, shape index: {}]   ;;  %s1580_s8 = inlined_call_operand.vmem [shape: f32[1,11], index: 8, kind: input, shape index: {}]   ;;  %s1581_s9 = inlined_call_operand.hbm [shape: f32[16,11], index: 9, kind: output, shape index: {}]  }
   0x1   :  { %15 = vsyncpa [#allocation4], 0 }
   0x2   :  { %17 = vsyncpa [#allocation4 + $0x1], 0  ;;  %s1240_s30 = smov 0   ;;  %s1242_s10 = smov 0  }
   0x3   :  { %s1244_s11 = smov 0   ;;  %s1246_s12 = smov 0  }
   0x4 LB: > { %s1261_s13 = sadd.s32 4294967295, %s1181_s12   ;;  %s826_s14 = sadd.s32 4294967294, %s1181_s12   ;;  %s1181_s12 = sphi %s1246_s12, %s1597_s12   ;;  %s1177_s11 = sphi %s1244_s11, %s1596_s11   ;;  %s1173_s10 = sphi %s1242_s10, %s1595_s10   ;;  %s1169_s30 = sphi %s1240_s30, %s1594_s30  }
   0x5   : > { %s1265_s15 = sadd.s32 1, %s1181_s12   ;;  %s224_s16 = sadd.s32 1, %s1177_s11 }
   0x6   : > { %s221_s17 = ssub.s32 %s1181_s12, %s1265_s15  ;;  %p234_p0 = scmp.ne.s32.totalorder %s1177_s11, %s1173_s10 }
   0x7   : > { %p222_p1 = scmp.eq.s32.totalorder %s221_s17, 0  ;;  %p235_p2 = scmp.eq.s32.totalorder %s1261_s13, 1 }
   0x8   : > { %p240_p3 = scmp.ne.s32.totalorder %s1173_s10, %s1169_s30  ;;  %p241_p4 = scmp.eq.s32.totalorder %s826_s14, 1 }
   0x9   : > { %s1276_s18 = scalar_select %p222_p1, %s1177_s11, %s224_s16  }
   0xa   : > { %p1278_p5 = por %p235_p2, %p234_p0  ;;  %p1282_p6 = por %p241_p4, %p240_p3 }
   0xb   : > { %p827_p7 = scmp.ge.s32.totalorder %s1181_s12, 1  ;;  %p248_p8 = scmp.lt.s32.totalorder %s1181_s12, 3 }
   0xc   : > { %s1585_s19 = scalar_select %p1278_p5, 1, 0 }
   0xd   : > { %s1586_s20 = scalar_select %p1282_p6, 1, 0 }
   0xe   : > { %p1582_p9 = scmp.eq.s32.totalorder %s1261_s13, 0  ;;  %p1289_p10 = pnand %p827_p7, %p248_p8 }
   0xf   : > { %s1183_s22 = smov [#allocation2]   ;;  %s1087_s27 = scalar_lea.hbm %s1573_s1, 768 }
  0x10   : > { %s1587_s21 = scalar_select %p1289_p10, 1, 0 }
  0x11   : > { %s260_s23 = sshll.u32 %s1183_s22, 4  ;;  %p1038_p11 = pneg %p1289_p10  ;;  %s261_s23 = int_to_ptr.vmem [resolvable:$true] %s260_s23 }
  0x12   : > { %p1088_p13 = scmp.ne.s32.totalorder %s1573_s1, %s1087_s27  ;;  %p1094_p3 = scmp.lt.u32.totalorder %s1087_s27, %s1573_s1 }
  0x13   : > { %p1297_p12 = pnand %p1582_p9, %p1038_p11 }
  0x15   : > { %p1089_p0 = pneg %p1297_p12 }
  0x17   : > { %p1090_p1 = pnand %p1089_p0, %p1088_p13 }
  0x19   : > { %p1091_p2 = pneg %p1090_p1 }
  0x1b   : > { %p1096_p4 = pnand %p1094_p3, %p1091_p2 }
  0x1d   : > { %1099 = shalt.err (!%p1096_p4)
}
  0x1e   : > { %s1100_s17 = scalar_lea.vmem %s261_s23, 768  ;;  %p1108_p9 = scmp.lt.s32.totalorder %s261_s23, %s261_s23 }
  0x1f   : > { %p1101_p7 = scmp.ne.s32.totalorder %s261_s23, %s1100_s17  ;;  %p1109_p6 = scmp.lt.s32.totalorder %s1100_s17, %s1100_s17 }
  0x21   : > { %p1103_p8 = pnand %p1101_p7, %p1089_p0  ;;  %p1110_p5 = por %p1109_p6, %p1108_p9 }
  0x23   : > { %p1104_p11 = pneg %p1103_p8 }
  0x25   : > { %p1111_p10 = pnand %p1110_p5, %p1104_p11 }
  0x27   : > { %1114 = shalt.err (!%p1111_p10)
}
  0x28   : > { %s1184_s22 = smov 256   ;;  %s1185_s25 = smov 16  }
  0x29   : > { %1041 = dma.hbm_to_vmem [thread:$0]  (!%p1297_p12), %s1573_s1, 768, %s261_s23, [#allocation3], %s1184_s22, %s1184_s22, %s1185_s25  }
  0x2a   : > { %p1589_p13 = scmp.ne.s32.totalorder %s1587_s21, 0 }
  0x2b   : > { %p1590_p1 = scmp.eq.s32.totalorder (!%p1589_p13), %s1261_s13, 0 }
  0x2c   : > { %304 = sbr.rel (%p1589_p13) target bundleno = 942 (0x3ae), region = 56 }
  0x33   : > { %1160 = dma.done.wait (%p1590_p1), [#allocation3], 768   ;;  %p1591_p0 = pmov %p1590_p1 }
  0x34   : > { %p339_p5 = scmp.lt.s32.totalorder %s1261_s13, 1  ;;  %v1186_v0 = vmov 0.0   ;;  %v345_v1 = vld [vmem:[#allocation2 + $0x8] sm:$0xff]  ;;  %v347_v2 = vld [vmem:[#allocation2 + $0x18] sm:$0xff]  ;;  %v344_v3 = vld [vmem:[#allocation2] sm:$0xff]  ;;  %vm366_vm0 = vcmask 1040384  }
  0x35   : > { %1162 = vsyncadd (%p1591_p0), [#allocation3], 4294966528  ;;  %437 = vmatprep.mubr.f32.mxu0 %v1186_v0  ;;  %v960_v4 = vpack.c.bf16 %v347_v2, %v345_v1  ;;  %v346_v5 = vld [vmem:[#allocation2 + $0x10] sm:$0xff]  ;;  %v349_v7 = vld [vmem:[#allocation2 + $0x28] sm:$0x1]  ;;  %vm362_vm1 = vcmask 138240  }
  0x36   : > { %s340_s24 = scalar_select %p339_p5, %s1261_s13, 1  ;;  %v962_v6 = vpack.c.bf16 %v346_v5, %v344_v3  ;;  %v462_v8 = vld [vmem:[%s1575_s3 + $0x80] sm:$0xff]  ;;  %v463_v9 = vld [vmem:[%s1575_s3 + $0x88] sm:$0xff]  ;;  %v464_v13 = vld [vmem:[%s1575_s3 + $0x90] sm:$0xff]  ;;  %v1187_v61 = vmov 0.0|0.0   ;;  %vm1188_vm2 = vmmov 0  }
  0x37   : > { %961 = vmatprep.subr.bf16.mxu0 %v960_v4  ;;  %v964_v10 = vpack.c.bf16 %v463_v9, %v462_v8  ;;  %v446_v11 = vld [vmem:[%s1575_s3] sm:$0xff]  ;;  %v447_v12 = vld [vmem:[%s1575_s3 + $0x8] sm:$0xff]  ;;  %v465_v15 = vld [vmem:[%s1575_s3 + $0x98] sm:$0xff]  ;;  %vm665_vm3 = vcmask 523264   ;;  %s336_s14 = sand.u32 1, %s1173_s10   ;;  %vm739_vm4 = vcmask 89088  }
  0x38   : > { %s833_s23 = sshll.u32 %s340_s24, 3  ;;  %963 = vmatpush1.bf16.msra.mxu0 %v962_v6  ;;  %v966_v14 = vpack.c.bf16 %v447_v12, %v446_v11  ;;  %v448_v16 = vld [vmem:[%s1575_s3 + $0x10] sm:$0xff]  ;;  %v449_v17 = vld [vmem:[%s1575_s3 + $0x18] sm:$0xff]  ;;  %v348_v18 = vld [vmem:[#allocation2 + $0x20] sm:$0x1]  ;;  %v968_v19 = vpack.c.bf16 %v465_v15, %v464_v13  ;;  %s742_s27 = scalar_lea.sflag [#allocation4], %s336_s14 }
  0x39   : > { %s342_s22 = scalar_lea.vmem %s1572_s0, %s833_s23  ;;  %834 = vmatprep.subr.msk.mxu0 %vm366_vm0, %v349_v7  ;;  %965 = vmatprep.subr.bf16.mxu1 %v964_v10  ;;  %v466_v20 = vld [vmem:[%s1575_s3 + $0xa0] sm:$0xff]  ;;  %v467_v21 = vld [vmem:[%s1575_s3 + $0xa8] sm:$0xff]  ;;  %v970_v23 = vpack.c.bf16 %v449_v17, %v448_v16  ;;  %v468_v27 = vld [vmem:[%s1575_s3 + $0xb0] sm:$0xff]  ;;  %s832_s23 = sshll.u32 %s336_s14, 3 }
  0x3a   : > { %v343_v22 = vld [vmem:[%s342_s22] sm:$0xff]  ;;  %967 = vmatpush3.bf16.msra.mxu1 %v966_v14  ;;  %v972_v24 = vpack.c.bf16 %v467_v21, %v466_v20  ;;  %v451_v26 = vld [vmem:[%s1575_s3 + $0x28] sm:$0xff]  ;;  %v469_v28 = vld [vmem:[%s1575_s3 + $0xb8] sm:$0xff]  ;;  %v352_v14 = vlaneseq  ;;  %s842_s22 = sshll.u32 %s1261_s13, 7  ;;  %s338_s25 = scalar_lea.vmem [#allocation5], %s832_s23 }
  0x3b   : > { %969 = vmatprep.subr.bf16.mxu1 %v968_v19  ;;  %v450_v25 = vld [vmem:[%s1575_s3 + $0x20] sm:$0xff]  ;;  %v976_v30 = vpack.c.bf16 %v469_v28, %v468_v27  ;;  %v452_v31 = vld [vmem:[%s1575_s3 + $0x30] sm:$0xff]  ;;  %v453_v32 = vld [vmem:[%s1575_s3 + $0x38] sm:$0xff]  ;;  %s755_s26 = sshll.u32 %s338_s25, 4  ;;  %s1530_s21 = scalar_lea.hbm %s1581_s9, %s842_s22  ;;  %s1532_s26 = int_to_ptr.vmem [resolvable:$true] %s755_s26 }
  0x3c   : > { %835 = vmatpush1.msk.msra.mxu0 %vm366_vm0, %v348_v18  ;;  %v974_v29 = vpack.c.bf16 %v451_v26, %v450_v25  ;;  %v470_v33 = vld [vmem:[%s1575_s3 + $0xc0] sm:$0xff]  ;;  %v471_v34 = vld [vmem:[%s1575_s3 + $0xc8] sm:$0xff]  ;;  %v978_v35 = vpack.c.bf16 %v453_v32, %v452_v31  ;;  %v472_v39 = vld [vmem:[%s1575_s3 + $0xd0] sm:$0xff]  ;;  %v353_v15 = vshrl.u32 %v352_v14, 7  ;;  %s1115_s29 = scalar_lea.vmem %s1532_s26, 128  ;;  %p1592_p9 = scmp.ne.s32.totalorder %s1585_s19, 0 }
  0x3d   : > { %836 = vmatmul.mubr.msk.f32.vlgmr.msra.gmra.mrb[0].mxu0 %vm362_vm1, %v343_v22  ;;  %v980_v36 = vpack.c.bf16 %v471_v34, %v470_v33  ;;  %v454_v37 = vld [vmem:[%s1575_s3 + $0x40] sm:$0xff]  ;;  %v455_v38 = vld [vmem:[%s1575_s3 + $0x48] sm:$0xff]  ;;  %v473_v40 = vld [vmem:[%s1575_s3 + $0xd8] sm:$0xff]  ;;  %996 = vmatprep.subr.bf16.mxu0 %v1187_v61  ;;  %p1116_p6 = scmp.ne.s32.totalorder %s1532_s26, %s1115_s29  ;;  %s1189_s13 = smov [#allocation5]  }
  0x3e   : > { %971 = vmatpush3.bf16.msra.mxu1 %v970_v23  ;;  %v982_v41 = vpack.c.bf16 %v455_v38, %v454_v37  ;;  %v984_v42 = vpack.c.bf16 %v473_v40, %v472_v39  ;;  %v456_v43 = vld [vmem:[%s1575_s3 + $0x50] sm:$0xff]  ;;  %v457_v44 = vld [vmem:[%s1575_s3 + $0x58] sm:$0xff]  ;;  %v474_v45 = vld [vmem:[%s1575_s3 + $0xe0] sm:$0xff]  ;;  %v354_v16 = vsub.s32 0, %v353_v15  ;;  %v358_v18 = vsub.s32 1, %v353_v15  ;;  %938 = vmatprep.mubr.msk.f32.mxu0 %vm1188_vm2, %v1186_v0  ;;  %s1119_s23 = sshll.u32 %s1189_s13, 4  ;;  %s1120_s23 = int_to_ptr.vmem [resolvable:$false] %s1119_s23 }
  0x3f   : > { %973 = vmatprep.subr.bf16.mxu1 %v972_v24  ;;  %v475_v46 = vld [vmem:[%s1575_s3 + $0xe8] sm:$0xff]  ;;  %v986_v47 = vpack.c.bf16 %v457_v44, %v456_v43  ;;  %v458_v49 = vld [vmem:[%s1575_s3 + $0x60] sm:$0xff]  ;;  %v476_v52 = vld [vmem:[%s1575_s3 + $0xf0] sm:$0xff]  ;;  %p1117_p10 = pnand %p1116_p6, %p1592_p9  ;;  %s1121_s16 = scalar_lea.vmem %s1120_s23, 256 }
  0x40   : > { %v988_v48 = vpack.c.bf16 %v475_v46, %v474_v45  ;;  %v459_v50 = vld [vmem:[%s1575_s3 + $0x68] sm:$0xff]  ;;  %v477_v53 = vld [vmem:[%s1575_s3 + $0xf8] sm:$0xff]  ;;  %v460_v55 = vld [vmem:[%s1575_s3 + $0x70] sm:$0xff]  ;;  %p1122_p2 = scmp.lt.s32.totalorder %s1532_s26, %s1120_s23  ;;  %p1123_p3 = scmp.lt.s32.totalorder %s1121_s16, %s1115_s29 }
  0x41   : > { %v990_v51 = vpack.c.bf16 %v459_v50, %v458_v49  ;;  %v992_v54 = vpack.c.bf16 %v477_v53, %v476_v52  ;;  %v461_v56 = vld [vmem:[%s1575_s3 + $0x78] sm:$0xff]  ;;  %v556_v58 = vld [vmem:[%s1577_s5] sm:$0xff]  ;;  %v557_v59 = vld [vmem:[%s1577_s5 + $0x8] sm:$0xff]  ;;  %p1118_p12 = pneg %p1117_p10 }
  0x42   : > { %975 = vmatpush3.bf16.msra.mxu1 %v974_v29  ;;  %v994_v57 = vpack.c.bf16 %v461_v56, %v460_v55  ;;  %v558_v60 = vld [vmem:[%s1577_s5 + $0x10] sm:$0xff]  ;;  %v997_v62 = vpack.c.bf16 %v557_v59, %v556_v58  ;;  %v559_v63 = vld [vmem:[%s1577_s5 + $0x18] sm:$0xff]  ;;  %v560_v2 = vld [vmem:[%s1577_s5 + $0x20] sm:$0xff]  ;;  %p1124_p4 = por %p1123_p3, %p1122_p2 }
  0x43   : > { %977 = vmatprep.subr.bf16.mxu1 %v976_v30  ;;  %v1000_v1 = vpack.c.bf16 %v559_v63, %v558_v60  ;;  %v561_v3 = vld [vmem:[%s1577_s5 + $0x28] sm:$0xff]  ;;  %v562_v5 = vld [vmem:[%s1577_s5 + $0x30] sm:$0xff]  ;;  %v563_v6 = vld [vmem:[%s1577_s5 + $0x38] sm:$0xff] }
  0x44   : > { %998 = vmatpush3.bf16.msra.mxu0 %v997_v62  ;;  %v1003_v4 = vpack.c.bf16 %v561_v3, %v560_v2  ;;  %v1006_v7 = vpack.c.bf16 %v563_v6, %v562_v5  ;;  %v564_v8 = vld [vmem:[%s1577_s5 + $0x40] sm:$0xff]  ;;  %v565_v9 = vld [vmem:[%s1577_s5 + $0x48] sm:$0xff]  ;;  %v566_v11 = vld [vmem:[%s1577_s5 + $0x50] sm:$0xff]  ;;  %p1125_p7 = pnand %p1124_p4, %p1118_p12 }
  0x45   : > { %999 = vmatprep.subr.bf16.mxu0 %v1187_v61  ;;  %v1009_v10 = vpack.c.bf16 %v565_v9, %v564_v8  ;;  %v567_v12 = vld [vmem:[%s1577_s5 + $0x58] sm:$0xff]  ;;  %v350_v17 = vld [vmem:[%s1574_s2] sm:$0x3]  ;;  %v569_v28 = vld [vmem:[%s1577_s5 + $0x68] sm:$0xff] }
  0x46   : > { %979 = vmatpush3.bf16.msra.mxu1 %v978_v35  ;;  %v1012_v13 = vpack.c.bf16 %v567_v12, %v566_v11  ;;  %v355_v19 = vrot.slane %v350_v17, %v354_v16  ;;  %v359_v20 = vrot.slane %v350_v17, %v358_v18  ;;  %v568_v27 = vld [vmem:[%s1577_s5 + $0x60] sm:$0xff]  ;;  %v570_v30 = vld [vmem:[%s1577_s5 + $0x70] sm:$0xff]  ;;  %v571_v31 = vld [vmem:[%s1577_s5 + $0x78] sm:$0xff] }
  0x47   : > { %981 = vmatprep.subr.bf16.mxu1 %v980_v36  ;;  %v1015_v29 = vpack.c.bf16 %v569_v28, %v568_v27  ;;  %v1018_v32 = vpack.c.bf16 %v571_v31, %v570_v30  ;;  %v650_v33 = vld [vmem:[%s1579_s7] sm:$0xff]  ;;  %v651_v34 = vld [vmem:[%s1579_s7 + $0x8] sm:$0xff]  ;;  %v652_v35 = vld [vmem:[%s1579_s7 + $0x10] sm:$0xff] }
  0x48   : > { %1001 = vmatpush3.bf16.msra.mxu0 %v1000_v1  ;;  %v1021_v36 = vpack.c.bf16 %v651_v34, %v650_v33  ;;  %v653_v37 = vld [vmem:[%s1579_s7 + $0x18] sm:$0xff]  ;;  %v655_v39 = vld [vmem:[%s1579_s7 + $0x28] sm:$0xff]  ;;  %v838_v50 = vld [vmem:[%s1578_s6] ss:$0 sm:$0xff] }
  0x49   : > { %1002 = vmatprep.subr.bf16.mxu0 %v1187_v61  ;;  %v1024_v38 = vpack.c.bf16 %v653_v37, %v652_v35  ;;  %v839_v55 = vld [vmem:[%s1580_s8] ss:$0 sm:$0xff] }
  0x4a   : > { %983 = vmatpush3.bf16.msra.mxu1 %v982_v41 }
  0x4b   : > { %985 = vmatprep.subr.bf16.mxu1 %v984_v42  ;;  %v837_v42 = vld [vmem:[%s1576_s4] ss:$0 sm:$0xff] }
  0x4c   : > { %1004 = vmatpush3.bf16.msra.mxu0 %v1003_v4 }
  0x4d   : > { %1005 = vmatprep.subr.bf16.mxu0 %v1187_v61 }
  0x4e   : > { %987 = vmatpush3.bf16.msra.mxu1 %v986_v47  ;;  %v656_v47 = vld [vmem:[%s1579_s7 + $0x30] sm:$0xff] }
  0x4f   : > { %989 = vmatprep.subr.bf16.mxu1 %v988_v48  ;;  %v657_v48 = vld [vmem:[%s1579_s7 + $0x38] sm:$0xff] }
  0x50   : > { %1007 = vmatpush3.bf16.msra.mxu0 %v1006_v7  ;;  %v1030_v49 = vpack.c.bf16 %v657_v48, %v656_v47 }
  0x51   : > { %1008 = vmatprep.subr.bf16.mxu0 %v1187_v61 }
  0x52   : > { %991 = vmatpush3.bf16.msra.mxu1 %v990_v51 }
  0x53   : > { %993 = vmatprep.subr.bf16.mxu1 %v992_v54 }
  0x54   : > { %1010 = vmatpush3.bf16.msra.mxu0 %v1009_v10 }
  0x55   : > { %1011 = vmatprep.subr.bf16.mxu0 %v1187_v61 }
  0x56   : > { %995 = vmatpush3.bf16.msra.mxu1 %v994_v57 }
  0x57   : > { %1020 = vmatprep.subr.bf16.mxu1 %v1187_v61 }
  0x58   : > { %1013 = vmatpush3.bf16.msra.mxu0 %v1012_v13 }
  0x59   : > { %1014 = vmatprep.subr.bf16.mxu0 %v1187_v61 }
  0x5c   : > { %1016 = vmatpush3.bf16.msra.mxu0 %v1015_v29 }
  0x5d   : > { %1017 = vmatprep.subr.bf16.mxu0 %v1187_v61 }
  0x60   : > { %1019 = vmatpush3.bf16.msra.mxu0 %v1018_v32 }
 0x110   : > { %v439_v21 = vpop.f32.mrb[0].mxu0 }
 0x111   : > { %v440_v22 = vadd.f32 %v439_v21, %v355_v19  ;;  %v441_v23 = vpop.f32.mrb[1].mxu0 }
 0x112   : > { %v442_v24 = vadd.f32 %v441_v23, %v359_v20 }
 0x113   : > { %v444_v26 = vmax.f32 %v440_v22, 0.0 }
 0x114   : > { %v445_v25 = vmax.f32 %v442_v24, 0.0 }
 0x116   : > { %549 = vmatprep.mubr.f32.mxu1 %v445_v25 }
 0x117   : > { %550 = vmatmul.mubr.f32.vlgmr.msra.gmra.mrb[0].mxu1 %v444_v26 }
 0x118   : > { %957 = vmatprep.mubr.msk.f32.mxu1 %vm1188_vm2, %v1186_v0  ;;  %1022 = vmatpush3.bf16.msra.mxu1 %v1021_v36  ;;  %v654_v0 = vld [vmem:[%s1579_s7 + $0x20] sm:$0xff] }
 0x119   : > { %1023 = vmatprep.subr.bf16.mxu1 %v1187_v61  ;;  %v1027_v40 = vpack.c.bf16 %v655_v39, %v654_v0 }
 0x11c   : > { %1025 = vmatpush3.bf16.msra.mxu1 %v1024_v38 }
 0x11d   : > { %1026 = vmatprep.subr.bf16.mxu1 %v1187_v61 }
 0x120   : > { %1028 = vmatpush3.bf16.msra.mxu1 %v1027_v40 }
 0x121   : > { %1029 = vmatprep.subr.bf16.mxu1 %v1187_v61 }
 0x124   : > { %1031 = vmatpush3.bf16.msra.mxu1 %v1030_v49 }
 0x1ea   : > { %v877_v41 = vpop.f32.mrb[0].mxu1 }
 0x1eb   : > { %v878_v43 = vpop.f32.mrb[1].mxu1 }
 0x1ec   : > { %v879_v44 = vadd.f32 %v878_v43, %v877_v41 }
 0x1ee   : > { %v552_v45 = vadd.f32 %v879_v44, %v837_v42 }
 0x1f0   : > { %v555_v46 = vmax.f32 %v552_v45, 0.0 }
 0x1f2   : > { %939 = vmatmul.mubr.f32.vlgmr.msra.gmra.mrb[2].mxu0 %v555_v46 }
 0x2c5   : > { %v645_v51 = vpop.f32.mrb[2].mxu0 }
 0x2c6   : > { %v646_v52 = vadd.f32 %v838_v50, %v645_v51  ;;  %v940_v53 = vpop.f32.mrb[3].mxu0 }
 0x2c8   : > { %v649_v54 = vmax.f32 %v646_v52, 0.0 }
 0x2ca   : > { %958 = vmatmul.mubr.msk.f32.vlgmr.msra.gmra.mrb[2].mxu1 %vm665_vm3, %v649_v54 }
 0x39d   : > { %v735_v56 = vpop.f32.mrb[2].mxu1 }
 0x39e   : > { %v736_v57 = vadd.f32 %v839_v55, %v735_v56  ;;  %v959_v58 = vpop.f32.mrb[3].mxu1 }
 0x3a0   : > { %740 = vst.msk [vmem:[%s338_s25] sm:$0xff] %vm739_vm4, %v736_v57 }
 0x3a1   : > { %1128 = shalt.err (!%p1125_p7)
}
 0x3a2   : > { %s1129_s14 = scalar_lea.hbm %s1530_s21, 128  ;;  %s1133_s25 = scalar_lea.hbm %s1581_s9, 256 }
 0x3a3   : > { %p1130_p8 = scmp.ne.s32.totalorder %s1530_s21, %s1129_s14  ;;  %p1134_p1 = scmp.lt.u32.totalorder %s1530_s21, %s1581_s9 }
 0x3a4   : > { %p1135_p0 = scmp.lt.u32.totalorder %s1133_s25, %s1129_s14  ;;  %p1137_p6 = scmp.lt.u32.totalorder %s1129_s14, %s1530_s21 }
 0x3a5   : > { %p1131_p11 = pnand %p1130_p8, %p1592_p9 }
 0x3a6   : > { %p1136_p5 = por %p1135_p0, %p1134_p1 }
 0x3a7   : > { %p1132_p13 = pneg %p1131_p11 }
 0x3a8   : > { %p1138_p10 = por %p1137_p6, %p1136_p5 }
 0x3aa   : > { %p1139_p12 = pnand %p1138_p10, %p1132_p13 }
 0x3ac   : > { %1142 = shalt.err (!%p1139_p12)
}
 0x3ad   : > { %1036 = dma.vmem_to_hbm [thread:$0]  (%p1592_p9), %s1532_s26, 128, %s1530_s21, %s742_s27  }
 0x3ae PF: > { %p1048_p2 = scmp.ge.s32.totalorder %s1181_s12, 2  ;;  %s767_s29 = sand.u32 1, %s1169_s30  }
 0x3af   : > { %p1593_p3 = scmp.ne.s32.totalorder %s1586_s20, 0  ;;  %s768_s13 = scalar_lea.sflag [#allocation4], %s767_s29 }
 0x3b1   : > { %p1043_p4 = pnand %p1048_p2, %p1593_p3 }
 0x3b3   : > { %1164 = dma.done.wait (!%p1043_p4), %s768_s13, 128  }
 0x3b4   : > { %1166 = vsyncadd (!%p1043_p4), %s768_s13, 4294967168  ;;  %p20_p7 = scmp.ge.s32.totalorder %s1265_s15, 4   ;;  %s1594_s30 = smov %s1173_s10 }
 0x3b5   : > { %s1595_s10 = smov %s1177_s11  ;;  %s1596_s11 = smov %s1276_s18 }
 0x3b6   : > { %s1597_s12 = smov %s1265_s15  ;;  %22 = sbr.rel (!%p20_p7) target bundleno = 4 (0x4), region = 96 }
 0x3bd   :  { %773 = vsyncpa [#allocation3], 1 }
 0x3be   :  { %775 = vsyncpa [#allocation3 + $0x1], 1 }
 0x3bf   :  { %776 = vsyncpa [#allocation4], 1 }
 0x3c0   :  { %778 = vsyncpa [#allocation4 + $0x1], 1 }

</bundles_post_ra>
